<compile_context>
chip_gen: v5e
topology: v5e:2x2
jax: 0.10.0
libtpu: 0.0.40
codegen_flags: <defaults>
</compile_context>

<pallas_src>
import functools
import math

import jax
import jax.numpy as jnp
from jax import lax
from jax.experimental import pallas as pl
from jax.experimental.pallas import tpu as pltpu


# ---------------------------------------------------------------------------
# helpers
# ---------------------------------------------------------------------------
def _sublane_align(dtype) -> int:
    """Minimum sublane multiple for this dtype (8 for f32, 16 for bf16, ...)."""
    return max(8, 32 // jnp.dtype(dtype).itemsize)


def _tile(dim: int, target: int, align: int) -> int:
    """Pick a block size for `dim`:
       * full dim if dim <= target (full-extent blocks are always legal),
       * else the largest aligned divisor <= target,
       * else the smallest aligned divisor > target (avoids one giant block),
       * else the full dim (legal, last resort)."""
    if dim <= target:
        return dim
    for t in range(min(target, dim), 0, -1):
        if dim % t == 0 and t % align == 0:
            return t
    start = ((target // align) + 1) * align
    for t in range(start, dim, align):
        if dim % t == 0:
            return t
    return dim


def _head_group(n_heads_flat: int, d_head: int, target: int = 512) -> int:
    """Largest divisor hb of n_heads_flat with hb*d_head <= target (>=1)."""
    best = 1
    for hb in range(1, n_heads_flat + 1):
        if n_heads_flat % hb == 0 and hb * d_head <= target:
            best = hb
    return best


@functools.lru_cache(maxsize=None)
def _vmem_limit_bytes() -> int:
    """Generation-aware VMEM limit: half of physical VMEM, capped at 64 MiB.
    (32 MiB on v7x's 64 MiB VMEM, 64 MiB on v5e/v6e's 128 MiB.)"""
    try:
        cap = pltpu.get_tpu_info().vmem_capacity_bytes
        return int(min(cap // 2, 64 * 1024 * 1024))
    except Exception:
        return 32 * 1024 * 1024


def _compiler_params(dim_semantics):
    return pltpu.CompilerParams(
        dimension_semantics=dim_semantics,
        vmem_limit_bytes=_vmem_limit_bytes(),
    )


# ---------------------------------------------------------------------------
# 1) QKV projection emitting head-split layout (3*H, M, dh)
#    Grid: (head_groups, M tiles, K tiles); dense (tm, hb*dh) MXU tile per step,
#    per-head slabs stored only at the last reduction step.
# ---------------------------------------------------------------------------
def _qkv_kernel(x_ref, w_ref, o_ref, acc_ref, *, hb, dh):
    k = pl.program_id(2)

    @pl.when(k == 0)
    def _init():
        acc_ref[...] = jnp.zeros_like(acc_ref)

    acc_ref[...] += jnp.dot(
        x_ref[...], w_ref[...], preferred_element_type=jnp.float32
    )

    @pl.when(k == pl.num_programs(2) - 1)
    def _store():
        acc = acc_ref[...]
        for j in range(hb):  # static unroll: per-head slabs of the dense tile
            o_ref[j] = acc[:, j * dh:(j + 1) * dh].astype(o_ref.dtype)


def _qkv_projection(x2d, w_grouped, dh, *, tm_target=1024, tk_target=512):
    M, D = x2d.shape
    G, D2, hbdh = w_grouped.shape
    assert D == D2 and hbdh % dh == 0
    hb = hbdh // dh
    n_flat_heads = G * hb

    tm = _tile(M, tm_target, _sublane_align(x2d.dtype))
    tk = _tile(D, tk_target, 128)
    grid = (G, M // tm, D // tk)

    itemsize = jnp.dtype(x2d.dtype).itemsize
    cost = pl.CostEstimate(
        flops=2 * M * D * n_flat_heads * dh,
        transcendentals=0,
        bytes_accessed=(M * D * G + D * n_flat_heads * dh * (M // tm)
                        + M * n_flat_heads * dh) * itemsize,
    )

    return pl.pallas_call(
        functools.partial(_qkv_kernel, hb=hb, dh=dh),
        out_shape=jax.ShapeDtypeStruct((n_flat_heads, M, dh), x2d.dtype),
        grid=grid,
        in_specs=[
            pl.BlockSpec((tm, tk), lambda g, i, k: (i, k)),
            pl.BlockSpec((None, tk, hbdh), lambda g, i, k: (g, k, 0)),
        ],
        out_specs=pl.BlockSpec((hb, tm, dh), lambda g, i, k: (g, i, 0)),
        scratch_shapes=[pltpu.VMEM((tm, hbdh), jnp.float32)],
        compiler_params=_compiler_params(("parallel", "parallel", "arbitrary")),
        cost_estimate=cost,
    )(x2d, w_grouped)


# ---------------------------------------------------------------------------
# 2) flash-style attention (online softmax over kv tiles), reading q/k/v from
#    the packed (3, H, B, N, dh) activation buffer (no transpose / no copies).
# ---------------------------------------------------------------------------
def _flash_kernel(q_ref, k_ref, v_ref, o_ref, m_ref, l_ref, acc_ref, *, scale):
    kv_i = pl.program_id(3)

    @pl.when(kv_i == 0)
    def _init():
        m_ref[...] = jnp.full_like(m_ref, -jnp.inf)
        l_ref[...] = jnp.zeros_like(l_ref)
        acc_ref[...] = jnp.zeros_like(acc_ref)

    q = q_ref[...] * scale    # scale folded into q: (tq, dh) mults, not (tq, tk)
    k = k_ref[...]
    # Contract the last (d_head) dims directly; no in-kernel k.T transpose.
    s = lax.dot_general(
        q, k, (((1,), (1,)), ((), ())), preferred_element_type=jnp.float32
    )                          # (tq, tk) f32 scores

    # TODO(synk): optional `mask` argument of Attention.forward is not
    # implemented (mask=None path only); a mask tile would be added to `s` here.

    m_prev = m_ref[...]
    m_new = jnp.maximum(m_prev, jnp.max(s, axis=-1, keepdims=True))
    alpha = jnp.exp(m_prev - m_new)
    p = jnp.exp(s - m_new)                               # f32 softmax math only
    l_ref[...] = alpha * l_ref[...] + jnp.sum(p, axis=-1, keepdims=True)
    acc_ref[...] = alpha * acc_ref[...] + jnp.dot(
        p.astype(v_ref.dtype), v_ref[...], preferred_element_type=jnp.float32
    )
    m_ref[...] = m_new

    @pl.when(kv_i == pl.num_programs(3) - 1)
    def _finalize():
        o_ref[...] = (
            acc_ref[...] * pl.reciprocal(l_ref[...], approx=True)
        ).astype(o_ref.dtype)


def _flash_attention(packed, scale, *, tq_target=512, tk_target=512):
    """packed: (3, H, B, N, dh) QKV activations.  Returns (B, H, N, dh)."""
    _, H, B, N, dh = packed.shape
    tq = _tile(N, tq_target, _sublane_align(packed.dtype))
    tk = _tile(N, tk_target, 128)        # kv tile 128-aligned -> lane-dense p@V
    grid = (B, H, N // tq, N // tk)

    q_spec = pl.BlockSpec((None, None, None, tq, dh),
                          lambda b, h, qi, ki: (0, h, b, qi, 0))
    k_spec = pl.BlockSpec((None, None, None, tk, dh),
                          lambda b, h, qi, ki: (1, h, b, ki, 0))
    v_spec = pl.BlockSpec((None, None, None, tk, dh),
                          lambda b, h, qi, ki: (2, h, b, ki, 0))
    o_spec = pl.BlockSpec((None, None, tq, dh),
                          lambda b, h, qi, ki: (b, h, qi, 0))

    itemsize = jnp.dtype(packed.dtype).itemsize
    q_tiles = N // tq
    cost = pl.CostEstimate(
        flops=4 * B * H * N * N * dh,
        transcendentals=B * H * N * N,
        # q + o once, k/v re-read once per q tile
        bytes_accessed=B * H * N * dh * (2 + 2 * q_tiles) * itemsize,
    )

    return pl.pallas_call(
        functools.partial(_flash_kernel, scale=scale),
        out_shape=jax.ShapeDtypeStruct((B, H, N, dh), packed.dtype),
        grid=grid,
        in_specs=[q_spec, k_spec, v_spec],
        out_specs=o_spec,
        scratch_shapes=[
            pltpu.VMEM((tq, 1), jnp.float32),   # running max
            pltpu.VMEM((tq, 1), jnp.float32),   # running denom
            pltpu.VMEM((tq, dh), jnp.float32),  # running numerator
        ],
        compiler_params=_compiler_params(
            ("parallel", "parallel", "parallel", "arbitrary")),
        cost_estimate=cost,
    )(packed, packed, packed)


# ---------------------------------------------------------------------------
# 3) head merge + output projection fused; hb heads per reduction step:
#    out[b, n, :] = sum_h attn[b, h, n, :] @ out_w_heads[h]
# ---------------------------------------------------------------------------
def _merge_kernel(a_ref, w_ref, o_ref, acc_ref, *, hb):
    g = pl.program_id(3)

    @pl.when(g == 0)
    def _init():
        acc_ref[...] = jnp.zeros_like(acc_ref)

    acc = acc_ref[...]
    for j in range(hb):      # static unroll: hb head contributions per step
        acc = acc + jnp.dot(a_ref[j], w_ref[j], preferred_element_type=jnp.float32)
    acc_ref[...] = acc

    @pl.when(g == pl.num_programs(3) - 1)
    def _store():
        o_ref[...] = acc_ref[...].astype(o_ref.dtype)


def _head_merge_out_proj(attn, w_heads, *, tm_target=1024, tn_target=512,
                         group_target=512):
    B, H, N, dh = attn.shape
    H2, dh2, D = w_heads.shape
    assert H == H2 and dh == dh2
    tm = _tile(N, tm_target, _sublane_align(attn.dtype))
    tn = _tile(D, tn_target, 128)
    hb = _head_group(H, dh, target=group_target)
    grid = (B, N // tm, D // tn, H // hb)

    itemsize = jnp.dtype(attn.dtype).itemsize
    cost = pl.CostEstimate(
        flops=2 * B * N * D * H * dh,
        transcendentals=0,
        bytes_accessed=(B * H * N * dh * (D // tn)
                        + H * dh * D * (B * (N // tm))
                        + B * N * D) * itemsize,
    )

    return pl.pallas_call(
        functools.partial(_merge_kernel, hb=hb),
        out_shape=jax.ShapeDtypeStruct((B, N, D), attn.dtype),
        grid=grid,
        in_specs=[
            pl.BlockSpec((None, hb, tm, dh), lambda b, i, j, g: (b, g, i, 0)),
            pl.BlockSpec((hb, dh, tn), lambda b, i, j, g: (g, 0, j)),
        ],
        out_specs=pl.BlockSpec((None, tm, tn), lambda b, i, j, g: (b, i, j)),
        scratch_shapes=[pltpu.VMEM((tm, tn), jnp.float32)],
        compiler_params=_compiler_params(
            ("parallel", "parallel", "parallel", "arbitrary")),
        cost_estimate=cost,
    )(attn, w_heads)


# ---------------------------------------------------------------------------
# forward
# ---------------------------------------------------------------------------
def prepare_params(qkv_w, out_w, n_heads, *, qkv_group_target=512):
    """Convert torch-layout Linear weights (out_features, in_features) into the
    layouts the kernels consume.  Done ONCE at parameter time, not per call."""
    d_model = out_w.shape[0]
    d_head = d_model // n_heads
    qkv_w_t = qkv_w.T                                        # (D, 3D)
    hb = _head_group(3 * n_heads, d_head, target=qkv_group_target)
    n_groups = (3 * n_heads) // hb
    # (G, D, hb*dh): group g holds flattened heads [g*hb, (g+1)*hb)
    qkv_w_grouped = qkv_w_t.reshape(d_model, n_groups, hb * d_head).transpose(1, 0, 2)
    out_w_heads = out_w.T.reshape(n_heads, d_head, d_model)  # (H, dh, D)
    return qkv_w_grouped, out_w_heads


@functools.partial(jax.jit, static_argnames=("n_heads",))
def attention_forward(x, qkv_w_grouped, out_w_heads, n_heads):
    """Pallas implementation of Attention.forward (mask=None path).

    x             : (B, N, D)
    qkv_w_grouped : (G, D, hb*dh)   pre-transposed, head-grouped qkv weight
    out_w_heads   : (H, dh, D)      pre-transposed, per-head output weight
    """
    B, N, D = x.shape
    dh = D // n_heads
    scale = 1.0 / math.sqrt(dh)
    M = B * N

    # ---- QKV projection straight into head-split layout (3H, M, dh) ----
    qkv_heads = _qkv_projection(x.reshape(M, D), qkv_w_grouped, dh)

    # Free reshape only (no transpose / extra HBM traffic): (3, H, B, N, dh)
    packed = qkv_heads.reshape(3, n_heads, B, N, dh)

    # ---- flash-style attention (online softmax over kv tiles) ----
    attn = _flash_attention(packed, scale)                   # (B, H, N, dh)

    # ---- head merge + output projection fused (lane-dense (B, N, D) store) --
    return _head_merge_out_proj(attn, out_w_heads)           # (B, N, D)


# ---------------------------------------------------------------------------
# Pure-JAX reference (for correctness check)
# ---------------------------------------------------------------------------
def attention_reference(x, qkv_w, out_w, n_heads):
    B, N, D = x.shape
    d_head = D // n_heads
    qkv = x @ qkv_w.T
    q, k, v = jnp.split(qkv, 3, axis=-1)
    to_heads = lambda t: t.reshape(B, N, n_heads, d_head).transpose(0, 2, 1, 3)
    q, k, v = map(to_heads, (q, k, v))
    attn = jnp.einsum("bhqd,bhkd->bhqk", q, k) / math.sqrt(d_head)
    attn = jax.nn.softmax(attn.astype(jnp.float32), axis=-1).astype(x.dtype)
    out = jnp.einsum("bhqk,bhkd->bhqd", attn, v)
    out = out.transpose(0, 2, 1, 3).reshape(B, N, D)
    return out @ out_w.T


# ---------------------------------------------------------------------------
if __name__ == "__main__":
    # Small config consistent with the module: d_model divisible by n_heads.
    B, N, D, H = 2, 8, 32, 4

    key = jax.random.PRNGKey(0)
    kx, kqkv, kout = jax.random.split(key, 3)

    x = jax.random.normal(kx, (B, N, D), dtype=jnp.float32)
    # nn.init.normal_(std=0.02), torch Linear weight layout (out, in)
    qkv_w = 0.02 * jax.random.normal(kqkv, (3 * D, D), dtype=jnp.float32)
    out_w = 0.02 * jax.random.normal(kout, (D, D), dtype=jnp.float32)

    qkv_w_grouped, out_w_heads = prepare_params(qkv_w, out_w, H)

    y = attention_forward(x, qkv_w_grouped, out_w_heads, n_heads=H)
    y = jax.block_until_ready(y)

    y_ref = attention_reference(x, qkv_w, out_w, H)
    assert y.shape == (B, N, D)
    # approx=True softmax reciprocal -> allow small absolute/relative slack.
    assert jnp.allclose(y, y_ref, atol=2e-3, rtol=1e-2), "mismatch vs reference"

    print("KERNEL_OK")
</pallas_src>

<mosaic_0001>
module attributes {stable_mosaic.version = 11 : i64} {
  func.func @_flash_kernel(%arg0: i32, %arg1: i32, %arg2: i32, %arg3: i32, %arg4: memref<1x1x1x8x8xf32, #tpu.memory_space<vmem>>, %arg5: memref<1x1x1x8x8xf32, #tpu.memory_space<vmem>>, %arg6: memref<1x1x1x8x8xf32, #tpu.memory_space<vmem>>, %arg7: memref<1x1x8x8xf32, #tpu.memory_space<vmem>>, %arg8: memref<8x1xf32, #tpu.memory_space<vmem>>, %arg9: memref<8x1xf32, #tpu.memory_space<vmem>>, %arg10: memref<8x8xf32, #tpu.memory_space<vmem>>) attributes {dimension_semantics = [#tpu.dimension_semantics<parallel>, #tpu.dimension_semantics<parallel>, #tpu.dimension_semantics<parallel>, #tpu.dimension_semantics<arbitrary>], iteration_bounds = array<i64: 2, 4, 1, 1>, scalar_prefetch = 0 : i64, scratch_operands = 3 : i64, tpu.core_type = #tpu.core_type<tc>, window_params = [{transform_indices = @transform_0, window_bounds = array<i64: 1, 1, 1, 8, 8>}, {transform_indices = @transform_1, window_bounds = array<i64: 1, 1, 1, 8, 8>}, {transform_indices = @transform_2, window_bounds = array<i64: 1, 1, 1, 8, 8>}, {transform_indices = @transform_3, window_bounds = array<i64: 1, 1, 8, 8>}]} {
    %c0_i32 = arith.constant 0 : i32
    %0 = arith.cmpi eq, %arg3, %c0_i32 : i32
    %1 = arith.extui %0 : i1 to i32
    %c0_i32_0 = arith.constant 0 : i32
    %2 = arith.cmpi ne, %1, %c0_i32_0 : i32
    scf.if %2 {
      %cst_33 = arith.constant 0xFF800000 : f32
      %37 = vector.broadcast %cst_33 : f32 to vector<8x1xf32>
      %c0_34 = arith.constant 0 : index
      %c0_35 = arith.constant 0 : index
      %38 = vector.load %arg8[%c0_34, %c0_35] : memref<8x1xf32, #tpu.memory_space<vmem>>, vector<8x1xf32>
      tpu.vector_store %arg8[%c0_34, %c0_35], %37 {strides = array<i32>} : memref<8x1xf32, #tpu.memory_space<vmem>>, vector<8x1xf32>,
      %cst_36 = arith.constant 0.000000e+00 : f32
      %39 = vector.broadcast %cst_36 : f32 to vector<8x1xf32>
      %c0_37 = arith.constant 0 : index
      %c0_38 = arith.constant 0 : index
      %40 = vector.load %arg9[%c0_37, %c0_38] : memref<8x1xf32, #tpu.memory_space<vmem>>, vector<8x1xf32>
      tpu.vector_store %arg9[%c0_37, %c0_38], %39 {strides = array<i32>} : memref<8x1xf32, #tpu.memory_space<vmem>>, vector<8x1xf32>,
      %cst_39 = arith.constant 0.000000e+00 : f32
      %41 = vector.broadcast %cst_39 : f32 to vector<8x8xf32>
      %c0_40 = arith.constant 0 : index
      %c0_41 = arith.constant 0 : index
      %42 = vector.load %arg10[%c0_40, %c0_41] : memref<8x8xf32, #tpu.memory_space<vmem>>, vector<8x8xf32>
      tpu.vector_store %arg10[%c0_40, %c0_41], %41 {strides = array<i32>} : memref<8x8xf32, #tpu.memory_space<vmem>>, vector<8x8xf32>,
    } else {
    }
    %c0 = arith.constant 0 : index
    %c0_1 = arith.constant 0 : index
    %c0_2 = arith.constant 0 : index
    %c0_3 = arith.constant 0 : index
    %c0_4 = arith.constant 0 : index
    %3 = vector.load %arg4[%c0, %c0_1, %c0_2, %c0_3, %c0_4] : memref<1x1x1x8x8xf32, #tpu.memory_space<vmem>>, vector<1x1x1x8x8xf32>
    %4 = vector.shape_cast %3 : vector<1x1x1x8x8xf32> to vector<8x8xf32>
    %cst = arith.constant 0.353553385 : f32
    %5 = vector.broadcast %cst : f32 to vector<8x8xf32>
    %6 = arith.mulf %4, %5 : vector<8x8xf32>
    %c0_5 = arith.constant 0 : index
    %c0_6 = arith.constant 0 : index
    %c0_7 = arith.constant 0 : index
    %c0_8 = arith.constant 0 : index
    %c0_9 = arith.constant 0 : index
    %7 = vector.load %arg5[%c0_5, %c0_6, %c0_7, %c0_8, %c0_9] : memref<1x1x1x8x8xf32, #tpu.memory_space<vmem>>, vector<1x1x1x8x8xf32>
    %8 = vector.shape_cast %7 : vector<1x1x1x8x8xf32> to vector<8x8xf32>
    %cst_10 = arith.constant dense<0.000000e+00> : vector<8x8xf32>
    %9 = tpu.matmul %6, %8, %cst_10 {dimension_numbers = #tpu.dot_dimension_numbers<[1], [1], [0], [0], [0, 0, 1, 0], [], []>} : vector<8x8xf32>, vector<8x8xf32>, vector<8x8xf32> -> vector<8x8xf32>
    %c0_11 = arith.constant 0 : index
    %c0_12 = arith.constant 0 : index
    %10 = vector.load %arg8[%c0_11, %c0_12] : memref<8x1xf32, #tpu.memory_space<vmem>>, vector<8x1xf32>
    %cst_13 = arith.constant dense<0xFF800000> : vector<8xf32>
    %11 = vector.multi_reduction <maximumf>, %9, %cst_13 [1] : vector<8x8xf32> to vector<8xf32>
    %12 = vector.shape_cast %11 : vector<8xf32> to vector<8x1xf32>
    %13 = arith.maximumf %10, %12 : vector<8x1xf32>
    %14 = arith.subf %10, %13 : vector<8x1xf32>
    %15 = math.exp %14 : vector<8x1xf32>
    %16 = vector.broadcast %13 : vector<8x1xf32> to vector<8x8xf32>
    %17 = arith.subf %9, %16 : vector<8x8xf32>
    %18 = math.exp %17 : vector<8x8xf32>
    %c0_14 = arith.constant 0 : index
    %c0_15 = arith.constant 0 : index
    %19 = vector.load %arg9[%c0_14, %c0_15] : memref<8x1xf32, #tpu.memory_space<vmem>>, vector<8x1xf32>
    %20 = arith.mulf %15, %19 : vector<8x1xf32>
    %cst_16 = arith.constant dense<0.000000e+00> : vector<8xf32>
    %21 = vector.multi_reduction <add>, %18, %cst_16 [1] : vector<8x8xf32> to vector<8xf32>
    %22 = vector.shape_cast %21 : vector<8xf32> to vector<8x1xf32>
    %23 = arith.addf %20, %22 : vector<8x1xf32>
    %c0_17 = arith.constant 0 : index
    %c0_18 = arith.constant 0 : index
    %24 = vector.load %arg9[%c0_17, %c0_18] : memref<8x1xf32, #tpu.memory_space<vmem>>, vector<8x1xf32>
    tpu.vector_store %arg9[%c0_17, %c0_18], %23 {strides = array<i32>} : memref<8x1xf32, #tpu.memory_space<vmem>>, vector<8x1xf32>,
    %c0_19 = arith.constant 0 : index
    %c0_20 = arith.constant 0 : index
    %25 = vector.load %arg10[%c0_19, %c0_20] : memref<8x8xf32, #tpu.memory_space<vmem>>, vector<8x8xf32>
    %26 = vector.broadcast %15 : vector<8x1xf32> to vector<8x8xf32>
    %27 = arith.mulf %26, %25 : vector<8x8xf32>
    %c0_21 = arith.constant 0 : index
    %c0_22 = arith.constant 0 : index
    %c0_23 = arith.constant 0 : index
    %c0_24 = arith.constant 0 : index
    %c0_25 = arith.constant 0 : index
    %28 = vector.load %arg6[%c0_21, %c0_22, %c0_23, %c0_24, %c0_25] : memref<1x1x1x8x8xf32, #tpu.memory_space<vmem>>, vector<1x1x1x8x8xf32>
    %29 = vector.shape_cast %28 : vector<1x1x1x8x8xf32> to vector<8x8xf32>
    %cst_26 = arith.constant dense<0.000000e+00> : vector<8x8xf32>
    %30 = tpu.matmul %18, %29, %cst_26 {dimension_numbers = #tpu.dot_dimension_numbers<[1], [0], [0], [1], [0, 0, 1, 1], [], []>} : vector<8x8xf32>, vector<8x8xf32>, vector<8x8xf32> -> vector<8x8xf32>
    %31 = arith.addf %27, %30 : vector<8x8xf32>
    %c0_27 = arith.constant 0 : index
    %c0_28 = arith.constant 0 : index
    %32 = vector.load %arg10[%c0_27, %c0_28] : memref<8x8xf32, #tpu.memory_space<vmem>>, vector<8x8xf32>
    tpu.vector_store %arg10[%c0_27, %c0_28], %31 {strides = array<i32>} : memref<8x8xf32, #tpu.memory_space<vmem>>, vector<8x8xf32>,
    %c0_29 = arith.constant 0 : index
    %c0_30 = arith.constant 0 : index
    %33 = vector.load %arg8[%c0_29, %c0_30] : memref<8x1xf32, #tpu.memory_space<vmem>>, vector<8x1xf32>
    tpu.vector_store %arg8[%c0_29, %c0_30], %13 {strides = array<i32>} : memref<8x1xf32, #tpu.memory_space<vmem>>, vector<8x1xf32>,
    %c0_i32_31 = arith.constant 0 : i32
    %34 = arith.cmpi eq, %arg3, %c0_i32_31 : i32
    %35 = arith.extui %34 : i1 to i32
    %c0_i32_32 = arith.constant 0 : i32
    %36 = arith.cmpi ne, %35, %c0_i32_32 : i32
    scf.if %36 {
      %c0_33 = arith.constant 0 : index
      %c0_34 = arith.constant 0 : index
      %37 = vector.load %arg10[%c0_33, %c0_34] : memref<8x8xf32, #tpu.memory_space<vmem>>, vector<8x8xf32>
      %c0_35 = arith.constant 0 : index
      %c0_36 = arith.constant 0 : index
      %38 = vector.load %arg9[%c0_35, %c0_36] : memref<8x1xf32, #tpu.memory_space<vmem>>, vector<8x1xf32>
      %39 = tpu.reciprocal %38 {approx = true} : vector<8x1xf32> -> vector<8x1xf32>
      %40 = vector.broadcast %39 : vector<8x1xf32> to vector<8x8xf32>
      %41 = arith.mulf %37, %40 : vector<8x8xf32>
      %c0_37 = arith.constant 0 : index
      %c0_38 = arith.constant 0 : index
      %c0_39 = arith.constant 0 : index
      %c0_40 = arith.constant 0 : index
      %42 = vector.load %arg7[%c0_37, %c0_38, %c0_39, %c0_40] : memref<1x1x8x8xf32, #tpu.memory_space<vmem>>, vector<1x1x8x8xf32>
      %43 = vector.shape_cast %42 : vector<1x1x8x8xf32> to vector<8x8xf32>
      %44 = vector.shape_cast %41 : vector<8x8xf32> to vector<1x1x8x8xf32>
      tpu.vector_store %arg7[%c0_37, %c0_38, %c0_39, %c0_40], %44 {strides = array<i32>} : memref<1x1x8x8xf32, #tpu.memory_space<vmem>>, vector<1x1x8x8xf32>,
    } else {
    }
    return
  }
  func.func @transform_0(%arg0: i32, %arg1: i32, %arg2: i32, %arg3: i32) -> (i32, i32, i32, i32, i32) {
    %c0_i32 = arith.constant 0 : i32
    %c0_i32_0 = arith.constant 0 : i32
    %c0_i32_1 = arith.constant 0 : i32
    return %c0_i32, %arg1, %arg0, %arg2, %c0_i32_0 : i32, i32, i32, i32, i32
  }
  func.func @transform_1(%arg0: i32, %arg1: i32, %arg2: i32, %arg3: i32) -> (i32, i32, i32, i32, i32) {
    %c1_i32 = arith.constant 1 : i32
    %c0_i32 = arith.constant 0 : i32
    %c0_i32_0 = arith.constant 0 : i32
    return %c1_i32, %arg1, %arg0, %arg3, %c0_i32 : i32, i32, i32, i32, i32
  }
  func.func @transform_2(%arg0: i32, %arg1: i32, %arg2: i32, %arg3: i32) -> (i32, i32, i32, i32, i32) {
    %c2_i32 = arith.constant 2 : i32
    %c0_i32 = arith.constant 0 : i32
    %c0_i32_0 = arith.constant 0 : i32
    return %c2_i32, %arg1, %arg0, %arg3, %c0_i32 : i32, i32, i32, i32, i32
  }
  func.func @transform_3(%arg0: i32, %arg1: i32, %arg2: i32, %arg3: i32) -> (i32, i32, i32, i32) {
    %c0_i32 = arith.constant 0 : i32
    %c0_i32_0 = arith.constant 0 : i32
    return %arg0, %arg1, %arg2, %c0_i32 : i32, i32, i32, i32
  }
}

module attributes {stable_mosaic.version = 11 : i64} {
  func.func @_qkv_kernel(%arg0: i32, %arg1: i32, %arg2: i32, %arg3: memref<16x32xf32, #tpu.memory_space<vmem>>, %arg4: memref<1x32x96xf32, #tpu.memory_space<vmem>>, %arg5: memref<12x16x8xf32, #tpu.memory_space<vmem>>, %arg6: memref<16x96xf32, #tpu.memory_space<vmem>>) attributes {dimension_semantics = [#tpu.dimension_semantics<parallel>, #tpu.dimension_semantics<parallel>, #tpu.dimension_semantics<arbitrary>], iteration_bounds = array<i64: 1, 1, 1>, scalar_prefetch = 0 : i64, scratch_operands = 1 : i64, tpu.core_type = #tpu.core_type<tc>, window_params = [{transform_indices = @transform_0, window_bounds = array<i64: 16, 32>}, {transform_indices = @transform_1, window_bounds = array<i64: 1, 32, 96>}, {transform_indices = @transform_2, window_bounds = array<i64: 12, 16, 8>}]} {
    %c0_i32 = arith.constant 0 : i32
    %0 = arith.cmpi eq, %arg2, %c0_i32 : i32
    %1 = arith.extui %0 : i1 to i32
    %c0_i32_0 = arith.constant 0 : i32
    %2 = arith.cmpi ne, %1, %c0_i32_0 : i32
    scf.if %2 {
      %cst_11 = arith.constant 0.000000e+00 : f32
      %13 = vector.broadcast %cst_11 : f32 to vector<16x96xf32>
      %c0_12 = arith.constant 0 : index
      %c0_13 = arith.constant 0 : index
      %14 = vector.load %arg6[%c0_12, %c0_13] : memref<16x96xf32, #tpu.memory_space<vmem>>, vector<16x96xf32>
      tpu.vector_store %arg6[%c0_12, %c0_13], %13 {strides = array<i32>} : memref<16x96xf32, #tpu.memory_space<vmem>>, vector<16x96xf32>,
    } else {
    }
    %c0 = arith.constant 0 : index
    %c0_1 = arith.constant 0 : index
    %3 = vector.load %arg6[%c0, %c0_1] : memref<16x96xf32, #tpu.memory_space<vmem>>, vector<16x96xf32>
    %c0_2 = arith.constant 0 : index
    %c0_3 = arith.constant 0 : index
    %4 = vector.load %arg3[%c0_2, %c0_3] : memref<16x32xf32, #tpu.memory_space<vmem>>, vector<16x32xf32>
    %c0_4 = arith.constant 0 : index
    %c0_5 = arith.constant 0 : index
    %c0_6 = arith.constant 0 : index
    %5 = vector.load %arg4[%c0_4, %c0_5, %c0_6] : memref<1x32x96xf32, #tpu.memory_space<vmem>>, vector<1x32x96xf32>
    %6 = vector.shape_cast %5 : vector<1x32x96xf32> to vector<32x96xf32>
    %cst = arith.constant dense<0.000000e+00> : vector<16x96xf32>
    %7 = tpu.matmul %4, %6, %cst {dimension_numbers = #tpu.dot_dimension_numbers<[1], [0], [0], [1], [0, 0, 1, 1], [], []>} : vector<16x32xf32>, vector<32x96xf32>, vector<16x96xf32> -> vector<16x96xf32>
    %8 = arith.addf %3, %7 : vector<16x96xf32>
    %c0_7 = arith.constant 0 : index
    %c0_8 = arith.constant 0 : index
    %9 = vector.load %arg6[%c0_7, %c0_8] : memref<16x96xf32, #tpu.memory_space<vmem>>, vector<16x96xf32>
    tpu.vector_store %arg6[%c0_7, %c0_8], %8 {strides = array<i32>} : memref<16x96xf32, #tpu.memory_space<vmem>>, vector<16x96xf32>,
    %c0_i32_9 = arith.constant 0 : i32
    %10 = arith.cmpi eq, %arg2, %c0_i32_9 : i32
    %11 = arith.extui %10 : i1 to i32
    %c0_i32_10 = arith.constant 0 : i32
    %12 = arith.cmpi ne, %11, %c0_i32_10 : i32
    scf.if %12 {
      %c0_11 = arith.constant 0 : index
      %c0_12 = arith.constant 0 : index
      %13 = vector.load %arg6[%c0_11, %c0_12] : memref<16x96xf32, #tpu.memory_space<vmem>>, vector<16x96xf32>
      %14 = vector.extract_strided_slice %13 {offsets = [0, 0], sizes = [16, 8], strides = [1, 1]} : vector<16x96xf32> to vector<16x8xf32>
      %c0_13 = arith.constant 0 : index
      %c0_14 = arith.constant 0 : index
      %c0_15 = arith.constant 0 : index
      %15 = vector.load %arg5[%c0_13, %c0_14, %c0_15] : memref<12x16x8xf32, #tpu.memory_space<vmem>>, vector<1x16x8xf32>
      %16 = vector.shape_cast %15 : vector<1x16x8xf32> to vector<16x8xf32>
      %17 = vector.shape_cast %14 : vector<16x8xf32> to vector<1x16x8xf32>
      tpu.vector_store %arg5[%c0_13, %c0_14, %c0_15], %17 {strides = array<i32>} : memref<12x16x8xf32, #tpu.memory_space<vmem>>, vector<1x16x8xf32>,
      %18 = vector.extract_strided_slice %13 {offsets = [0, 8], sizes = [16, 8], strides = [1, 1]} : vector<16x96xf32> to vector<16x8xf32>
      %c1 = arith.constant 1 : index
      %c0_16 = arith.constant 0 : index
      %c0_17 = arith.constant 0 : index
      %19 = vector.load %arg5[%c1, %c0_16, %c0_17] : memref<12x16x8xf32, #tpu.memory_space<vmem>>, vector<1x16x8xf32>
      %20 = vector.shape_cast %19 : vector<1x16x8xf32> to vector<16x8xf32>
      %21 = vector.shape_cast %18 : vector<16x8xf32> to vector<1x16x8xf32>
      tpu.vector_store %arg5[%c1, %c0_16, %c0_17], %21 {strides = array<i32>} : memref<12x16x8xf32, #tpu.memory_space<vmem>>, vector<1x16x8xf32>,
      %22 = vector.extract_strided_slice %13 {offsets = [0, 16], sizes = [16, 8], strides = [1, 1]} : vector<16x96xf32> to vector<16x8xf32>
      %c2 = arith.constant 2 : index
      %c0_18 = arith.constant 0 : index
      %c0_19 = arith.constant 0 : index
      %23 = vector.load %arg5[%c2, %c0_18, %c0_19] : memref<12x16x8xf32, #tpu.memory_space<vmem>>, vector<1x16x8xf32>
      %24 = vector.shape_cast %23 : vector<1x16x8xf32> to vector<16x8xf32>
      %25 = vector.shape_cast %22 : vector<16x8xf32> to vector<1x16x8xf32>
      tpu.vector_store %arg5[%c2, %c0_18, %c0_19], %25 {strides = array<i32>} : memref<12x16x8xf32, #tpu.memory_space<vmem>>, vector<1x16x8xf32>,
      %26 = vector.extract_strided_slice %13 {offsets = [0, 24], sizes = [16, 8], strides = [1, 1]} : vector<16x96xf32> to vector<16x8xf32>
      %c3 = arith.constant 3 : index
      %c0_20 = arith.constant 0 : index
      %c0_21 = arith.constant 0 : index
      %27 = vector.load %arg5[%c3, %c0_20, %c0_21] : memref<12x16x8xf32, #tpu.memory_space<vmem>>, vector<1x16x8xf32>
      %28 = vector.shape_cast %27 : vector<1x16x8xf32> to vector<16x8xf32>
      %29 = vector.shape_cast %26 : vector<16x8xf32> to vector<1x16x8xf32>
      tpu.vector_store %arg5[%c3, %c0_20, %c0_21], %29 {strides = array<i32>} : memref<12x16x8xf32, #tpu.memory_space<vmem>>, vector<1x16x8xf32>,
      %30 = vector.extract_strided_slice %13 {offsets = [0, 32], sizes = [16, 8], strides = [1, 1]} : vector<16x96xf32> to vector<16x8xf32>
      %c4 = arith.constant 4 : index
      %c0_22 = arith.constant 0 : index
      %c0_23 = arith.constant 0 : index
      %31 = vector.load %arg5[%c4, %c0_22, %c0_23] : memref<12x16x8xf32, #tpu.memory_space<vmem>>, vector<1x16x8xf32>
      %32 = vector.shape_cast %31 : vector<1x16x8xf32> to vector<16x8xf32>
      %33 = vector.shape_cast %30 : vector<16x8xf32> to vector<1x16x8xf32>
      tpu.vector_store %arg5[%c4, %c0_22, %c0_23], %33 {strides = array<i32>} : memref<12x16x8xf32, #tpu.memory_space<vmem>>, vector<1x16x8xf32>,
      %34 = vector.extract_strided_slice %13 {offsets = [0, 40], sizes = [16, 8], strides = [1, 1]} : vector<16x96xf32> to vector<16x8xf32>
      %c5 = arith.constant 5 : index
      %c0_24 = arith.constant 0 : index
      %c0_25 = arith.constant 0 : index
      %35 = vector.load %arg5[%c5, %c0_24, %c0_25] : memref<12x16x8xf32, #tpu.memory_space<vmem>>, vector<1x16x8xf32>
      %36 = vector.shape_cast %35 : vector<1x16x8xf32> to vector<16x8xf32>
      %37 = vector.shape_cast %34 : vector<16x8xf32> to vector<1x16x8xf32>
      tpu.vector_store %arg5[%c5, %c0_24, %c0_25], %37 {strides = array<i32>} : memref<12x16x8xf32, #tpu.memory_space<vmem>>, vector<1x16x8xf32>,
      %38 = vector.extract_strided_slice %13 {offsets = [0, 48], sizes = [16, 8], strides = [1, 1]} : vector<16x96xf32> to vector<16x8xf32>
      %c6 = arith.constant 6 : index
      %c0_26 = arith.constant 0 : index
      %c0_27 = arith.constant 0 : index
      %39 = vector.load %arg5[%c6, %c0_26, %c0_27] : memref<12x16x8xf32, #tpu.memory_space<vmem>>, vector<1x16x8xf32>
      %40 = vector.shape_cast %39 : vector<1x16x8xf32> to vector<16x8xf32>
      %41 = vector.shape_cast %38 : vector<16x8xf32> to vector<1x16x8xf32>
      tpu.vector_store %arg5[%c6, %c0_26, %c0_27], %41 {strides = array<i32>} : memref<12x16x8xf32, #tpu.memory_space<vmem>>, vector<1x16x8xf32>,
      %42 = vector.extract_strided_slice %13 {offsets = [0, 56], sizes = [16, 8], strides = [1, 1]} : vector<16x96xf32> to vector<16x8xf32>
      %c7 = arith.constant 7 : index
      %c0_28 = arith.constant 0 : index
      %c0_29 = arith.constant 0 : index
      %43 = vector.load %arg5[%c7, %c0_28, %c0_29] : memref<12x16x8xf32, #tpu.memory_space<vmem>>, vector<1x16x8xf32>
      %44 = vector.shape_cast %43 : vector<1x16x8xf32> to vector<16x8xf32>
      %45 = vector.shape_cast %42 : vector<16x8xf32> to vector<1x16x8xf32>
      tpu.vector_store %arg5[%c7, %c0_28, %c0_29], %45 {strides = array<i32>} : memref<12x16x8xf32, #tpu.memory_space<vmem>>, vector<1x16x8xf32>,
      %46 = vector.extract_strided_slice %13 {offsets = [0, 64], sizes = [16, 8], strides = [1, 1]} : vector<16x96xf32> to vector<16x8xf32>
      %c8 = arith.constant 8 : index
      %c0_30 = arith.constant 0 : index
      %c0_31 = arith.constant 0 : index
      %47 = vector.load %arg5[%c8, %c0_30, %c0_31] : memref<12x16x8xf32, #tpu.memory_space<vmem>>, vector<1x16x8xf32>
      %48 = vector.shape_cast %47 : vector<1x16x8xf32> to vector<16x8xf32>
      %49 = vector.shape_cast %46 : vector<16x8xf32> to vector<1x16x8xf32>
      tpu.vector_store %arg5[%c8, %c0_30, %c0_31], %49 {strides = array<i32>} : memref<12x16x8xf32, #tpu.memory_space<vmem>>, vector<1x16x8xf32>,
      %50 = vector.extract_strided_slice %13 {offsets = [0, 72], sizes = [16, 8], strides = [1, 1]} : vector<16x96xf32> to vector<16x8xf32>
      %c9 = arith.constant 9 : index
      %c0_32 = arith.constant 0 : index
      %c0_33 = arith.constant 0 : index
      %51 = vector.load %arg5[%c9, %c0_32, %c0_33] : memref<12x16x8xf32, #tpu.memory_space<vmem>>, vector<1x16x8xf32>
      %52 = vector.shape_cast %51 : vector<1x16x8xf32> to vector<16x8xf32>
      %53 = vector.shape_cast %50 : vector<16x8xf32> to vector<1x16x8xf32>
      tpu.vector_store %arg5[%c9, %c0_32, %c0_33], %53 {strides = array<i32>} : memref<12x16x8xf32, #tpu.memory_space<vmem>>, vector<1x16x8xf32>,
      %54 = vector.extract_strided_slice %13 {offsets = [0, 80], sizes = [16, 8], strides = [1, 1]} : vector<16x96xf32> to vector<16x8xf32>
      %c10 = arith.constant 10 : index
      %c0_34 = arith.constant 0 : index
      %c0_35 = arith.constant 0 : index
      %55 = vector.load %arg5[%c10, %c0_34, %c0_35] : memref<12x16x8xf32, #tpu.memory_space<vmem>>, vector<1x16x8xf32>
      %56 = vector.shape_cast %55 : vector<1x16x8xf32> to vector<16x8xf32>
      %57 = vector.shape_cast %54 : vector<16x8xf32> to vector<1x16x8xf32>
      tpu.vector_store %arg5[%c10, %c0_34, %c0_35], %57 {strides = array<i32>} : memref<12x16x8xf32, #tpu.memory_space<vmem>>, vector<1x16x8xf32>,
      %58 = vector.extract_strided_slice %13 {offsets = [0, 88], sizes = [16, 8], strides = [1, 1]} : vector<16x96xf32> to vector<16x8xf32>
      %c11 = arith.constant 11 : index
      %c0_36 = arith.constant 0 : index
      %c0_37 = arith.constant 0 : index
      %59 = vector.load %arg5[%c11, %c0_36, %c0_37] : memref<12x16x8xf32, #tpu.memory_space<vmem>>, vector<1x16x8xf32>
      %60 = vector.shape_cast %59 : vector<1x16x8xf32> to vector<16x8xf32>
      %61 = vector.shape_cast %58 : vector<16x8xf32> to vector<1x16x8xf32>
      tpu.vector_store %arg5[%c11, %c0_36, %c0_37], %61 {strides = array<i32>} : memref<12x16x8xf32, #tpu.memory_space<vmem>>, vector<1x16x8xf32>,
    } else {
    }
    return
  }
  func.func @transform_0(%arg0: i32, %arg1: i32, %arg2: i32) -> (i32, i32) {
    %c0_i32 = arith.constant 0 : i32
    return %arg1, %arg2 : i32, i32
  }
  func.func @transform_1(%arg0: i32, %arg1: i32, %arg2: i32) -> (i32, i32, i32) {
    %c0_i32 = arith.constant 0 : i32
    %c0_i32_0 = arith.constant 0 : i32
    return %arg0, %arg2, %c0_i32 : i32, i32, i32
  }
  func.func @transform_2(%arg0: i32, %arg1: i32, %arg2: i32) -> (i32, i32, i32) {
    %c0_i32 = arith.constant 0 : i32
    %c0_i32_0 = arith.constant 0 : i32
    return %arg0, %arg1, %c0_i32 : i32, i32, i32
  }
}

module attributes {stable_mosaic.version = 11 : i64} {
  func.func @_merge_kernel(%arg0: i32, %arg1: i32, %arg2: i32, %arg3: i32, %arg4: memref<1x4x8x8xf32, #tpu.memory_space<vmem>>, %arg5: memref<4x8x32xf32, #tpu.memory_space<vmem>>, %arg6: memref<1x8x32xf32, #tpu.memory_space<vmem>>, %arg7: memref<8x32xf32, #tpu.memory_space<vmem>>) attributes {dimension_semantics = [#tpu.dimension_semantics<parallel>, #tpu.dimension_semantics<parallel>, #tpu.dimension_semantics<parallel>, #tpu.dimension_semantics<arbitrary>], iteration_bounds = array<i64: 2, 1, 1, 1>, scalar_prefetch = 0 : i64, scratch_operands = 1 : i64, tpu.core_type = #tpu.core_type<tc>, window_params = [{transform_indices = @transform_0, window_bounds = array<i64: 1, 4, 8, 8>}, {transform_indices = @transform_1, window_bounds = array<i64: 4, 8, 32>}, {transform_indices = @transform_2, window_bounds = array<i64: 1, 8, 32>}]} {
    %c0_i32 = arith.constant 0 : i32
    %0 = arith.cmpi eq, %arg3, %c0_i32 : i32
    %1 = arith.extui %0 : i1 to i32
    %c0_i32_0 = arith.constant 0 : i32
    %2 = arith.cmpi ne, %1, %c0_i32_0 : i32
    scf.if %2 {
      %cst_34 = arith.constant 0.000000e+00 : f32
      %32 = vector.broadcast %cst_34 : f32 to vector<8x32xf32>
      %c0_35 = arith.constant 0 : index
      %c0_36 = arith.constant 0 : index
      %33 = vector.load %arg7[%c0_35, %c0_36] : memref<8x32xf32, #tpu.memory_space<vmem>>, vector<8x32xf32>
      tpu.vector_store %arg7[%c0_35, %c0_36], %32 {strides = array<i32>} : memref<8x32xf32, #tpu.memory_space<vmem>>, vector<8x32xf32>,
    } else {
    }
    %c0 = arith.constant 0 : index
    %c0_1 = arith.constant 0 : index
    %3 = vector.load %arg7[%c0, %c0_1] : memref<8x32xf32, #tpu.memory_space<vmem>>, vector<8x32xf32>
    %c0_2 = arith.constant 0 : index
    %c0_3 = arith.constant 0 : index
    %c0_4 = arith.constant 0 : index
    %c0_5 = arith.constant 0 : index
    %4 = vector.load %arg4[%c0_2, %c0_3, %c0_4, %c0_5] : memref<1x4x8x8xf32, #tpu.memory_space<vmem>>, vector<1x1x8x8xf32>
    %5 = vector.shape_cast %4 : vector<1x1x8x8xf32> to vector<8x8xf32>
    %c0_6 = arith.constant 0 : index
    %c0_7 = arith.constant 0 : index
    %c0_8 = arith.constant 0 : index
    %6 = vector.load %arg5[%c0_6, %c0_7, %c0_8] : memref<4x8x32xf32, #tpu.memory_space<vmem>>, vector<1x8x32xf32>
    %7 = vector.shape_cast %6 : vector<1x8x32xf32> to vector<8x32xf32>
    %cst = arith.constant dense<0.000000e+00> : vector<8x32xf32>
    %8 = tpu.matmul %5, %7, %cst {dimension_numbers = #tpu.dot_dimension_numbers<[1], [0], [0], [1], [0, 0, 1, 1], [], []>} : vector<8x8xf32>, vector<8x32xf32>, vector<8x32xf32> -> vector<8x32xf32>
    %9 = arith.addf %3, %8 : vector<8x32xf32>
    %c0_9 = arith.constant 0 : index
    %c1 = arith.constant 1 : index
    %c0_10 = arith.constant 0 : index
    %c0_11 = arith.constant 0 : index
    %10 = vector.load %arg4[%c0_9, %c1, %c0_10, %c0_11] : memref<1x4x8x8xf32, #tpu.memory_space<vmem>>, vector<1x1x8x8xf32>
    %11 = vector.shape_cast %10 : vector<1x1x8x8xf32> to vector<8x8xf32>
    %c1_12 = arith.constant 1 : index
    %c0_13 = arith.constant 0 : index
    %c0_14 = arith.constant 0 : index
    %12 = vector.load %arg5[%c1_12, %c0_13, %c0_14] : memref<4x8x32xf32, #tpu.memory_space<vmem>>, vector<1x8x32xf32>
    %13 = vector.shape_cast %12 : vector<1x8x32xf32> to vector<8x32xf32>
    %cst_15 = arith.constant dense<0.000000e+00> : vector<8x32xf32>
    %14 = tpu.matmul %11, %13, %cst_15 {dimension_numbers = #tpu.dot_dimension_numbers<[1], [0], [0], [1], [0, 0, 1, 1], [], []>} : vector<8x8xf32>, vector<8x32xf32>, vector<8x32xf32> -> vector<8x32xf32>
    %15 = arith.addf %9, %14 : vector<8x32xf32>
    %c0_16 = arith.constant 0 : index
    %c2 = arith.constant 2 : index
    %c0_17 = arith.constant 0 : index
    %c0_18 = arith.constant 0 : index
    %16 = vector.load %arg4[%c0_16, %c2, %c0_17, %c0_18] : memref<1x4x8x8xf32, #tpu.memory_space<vmem>>, vector<1x1x8x8xf32>
    %17 = vector.shape_cast %16 : vector<1x1x8x8xf32> to vector<8x8xf32>
    %c2_19 = arith.constant 2 : index
    %c0_20 = arith.constant 0 : index
    %c0_21 = arith.constant 0 : index
    %18 = vector.load %arg5[%c2_19, %c0_20, %c0_21] : memref<4x8x32xf32, #tpu.memory_space<vmem>>, vector<1x8x32xf32>
    %19 = vector.shape_cast %18 : vector<1x8x32xf32> to vector<8x32xf32>
    %cst_22 = arith.constant dense<0.000000e+00> : vector<8x32xf32>
    %20 = tpu.matmul %17, %19, %cst_22 {dimension_numbers = #tpu.dot_dimension_numbers<[1], [0], [0], [1], [0, 0, 1, 1], [], []>} : vector<8x8xf32>, vector<8x32xf32>, vector<8x32xf32> -> vector<8x32xf32>
    %21 = arith.addf %15, %20 : vector<8x32xf32>
    %c0_23 = arith.constant 0 : index
    %c3 = arith.constant 3 : index
    %c0_24 = arith.constant 0 : index
    %c0_25 = arith.constant 0 : index
    %22 = vector.load %arg4[%c0_23, %c3, %c0_24, %c0_25] : memref<1x4x8x8xf32, #tpu.memory_space<vmem>>, vector<1x1x8x8xf32>
    %23 = vector.shape_cast %22 : vector<1x1x8x8xf32> to vector<8x8xf32>
    %c3_26 = arith.constant 3 : index
    %c0_27 = arith.constant 0 : index
    %c0_28 = arith.constant 0 : index
    %24 = vector.load %arg5[%c3_26, %c0_27, %c0_28] : memref<4x8x32xf32, #tpu.memory_space<vmem>>, vector<1x8x32xf32>
    %25 = vector.shape_cast %24 : vector<1x8x32xf32> to vector<8x32xf32>
    %cst_29 = arith.constant dense<0.000000e+00> : vector<8x32xf32>
    %26 = tpu.matmul %23, %25, %cst_29 {dimension_numbers = #tpu.dot_dimension_numbers<[1], [0], [0], [1], [0, 0, 1, 1], [], []>} : vector<8x8xf32>, vector<8x32xf32>, vector<8x32xf32> -> vector<8x32xf32>
    %27 = arith.addf %21, %26 : vector<8x32xf32>
    %c0_30 = arith.constant 0 : index
    %c0_31 = arith.constant 0 : index
    %28 = vector.load %arg7[%c0_30, %c0_31] : memref<8x32xf32, #tpu.memory_space<vmem>>, vector<8x32xf32>
    tpu.vector_store %arg7[%c0_30, %c0_31], %27 {strides = array<i32>} : memref<8x32xf32, #tpu.memory_space<vmem>>, vector<8x32xf32>,
    %c0_i32_32 = arith.constant 0 : i32
    %29 = arith.cmpi eq, %arg3, %c0_i32_32 : i32
    %30 = arith.extui %29 : i1 to i32
    %c0_i32_33 = arith.constant 0 : i32
    %31 = arith.cmpi ne, %30, %c0_i32_33 : i32
    scf.if %31 {
      %c0_34 = arith.constant 0 : index
      %c0_35 = arith.constant 0 : index
      %32 = vector.load %arg7[%c0_34, %c0_35] : memref<8x32xf32, #tpu.memory_space<vmem>>, vector<8x32xf32>
      %c0_36 = arith.constant 0 : index
      %c0_37 = arith.constant 0 : index
      %c0_38 = arith.constant 0 : index
      %33 = vector.load %arg6[%c0_36, %c0_37, %c0_38] : memref<1x8x32xf32, #tpu.memory_space<vmem>>, vector<1x8x32xf32>
      %34 = vector.shape_cast %33 : vector<1x8x32xf32> to vector<8x32xf32>
      %35 = vector.shape_cast %32 : vector<8x32xf32> to vector<1x8x32xf32>
      tpu.vector_store %arg6[%c0_36, %c0_37, %c0_38], %35 {strides = array<i32>} : memref<1x8x32xf32, #tpu.memory_space<vmem>>, vector<1x8x32xf32>,
    } else {
    }
    return
  }
  func.func @transform_0(%arg0: i32, %arg1: i32, %arg2: i32, %arg3: i32) -> (i32, i32, i32, i32) {
    %c0_i32 = arith.constant 0 : i32
    %c0_i32_0 = arith.constant 0 : i32
    return %arg0, %arg3, %arg1, %c0_i32 : i32, i32, i32, i32
  }
  func.func @transform_1(%arg0: i32, %arg1: i32, %arg2: i32, %arg3: i32) -> (i32, i32, i32) {
    %c0_i32 = arith.constant 0 : i32
    %c0_i32_0 = arith.constant 0 : i32
    return %arg3, %c0_i32, %arg2 : i32, i32, i32
  }
  func.func @transform_2(%arg0: i32, %arg1: i32, %arg2: i32, %arg3: i32) -> (i32, i32, i32) {
    %c0_i32 = arith.constant 0 : i32
    return %arg0, %arg1, %arg2 : i32, i32, i32
  }
}

</mosaic_0001>

<bundles_post_ra>
// kernel: attention_forward.5
= control target key start
LH: loop header
LB: loop body
LE: loop exit
PB: predicated region body
PF: predicated region fallthrough
CT: control target
= control target key end

     0   :  { %7 = vsyncpa [#allocation4], 0  ;;  %s765_s0 = inlined_call_operand.vmem [shape: f32[2,4,8,8], index: 0, kind: input, shape index: {}]   ;;  %s766_s1 = inlined_call_operand.vmem [shape: f32[4,8,32], index: 1, kind: input, shape index: {}]   ;;  %s767_s2 = inlined_call_operand.hbm [shape: f32[2,8,32], index: 2, kind: output, shape index: {}]  }
   0x1   :  { %9 = vsyncpa [#allocation4 + $0x1], 0  ;;  %s653_s9 = smov 0   ;;  %s655_s10 = smov 0  }
   0x2   :  { %s657_s11 = smov 0   ;;  %s659_s12 = smov 0  }
   0x3   :  { %s661_s13 = smov 0   ;;  %s663_s14 = smov 0  }
   0x4 LB: > { %s477_s15 = sadd.s32 4294967295, %s635_s14   ;;  %s478_s16 = sadd.s32 4294967294, %s635_s14   ;;  %s635_s14 = sphi %s663_s14, %s15_s14   ;;  %s631_s13 = sphi %s661_s13, %s774_s13   ;;  %s627_s12 = sphi %s659_s12, %s773_s12   ;;  %s623_s11 = sphi %s657_s11, %s772_s11   ;;  %s619_s10 = sphi %s655_s10, %s771_s10   ;;  %s615_s9 = sphi %s653_s9, %s770_s9  }
   0x5   : > { %s41_s17 = sadd.s32 1, %s631_s13  ;;  %s110_s18 = sadd.s32 1, %s623_s11 }
   0x6   : > { %p43_p0 = scmp.ge.s32.totalorder %s41_s17, 2  ;;  %p120_p1 = scmp.ne.s32.totalorder %s623_s11, %s619_s10 }
   0x7   : > { %p121_p2 = scmp.eq.s32.totalorder %s477_s15, 1  ;;  %p126_p3 = scmp.ne.s32.totalorder %s619_s10, %s615_s9 }
   0x8   : > { %s776_s17 = smov (%p43_p0, %s41_s17), 0  ;;  %p127_p5 = scmp.eq.s32.totalorder %s478_s16, 1 }
   0x9   : > { %p693_p4 = por %p121_p2, %p120_p1  ;;  %s103_s20 = ssub.s32 %s631_s13, %s776_s17 }
   0xa   : > { %p482_p6 = scmp.ge.s32.totalorder %s635_s14, 1  ;;  %p108_p7 = scmp.eq.s32.totalorder %s103_s20, 0 }
   0xb   : > { %p700_p8 = por %p127_p5, %p126_p3  ;;  %p173_p9 = scmp.lt.s32.totalorder %s635_s14, 3 }
   0xc   : > { %s706_s22 = scalar_select %p108_p7, %s623_s11, %s110_s18  }
   0xd   : > { %p174_p10 = pnand %p482_p6, %p173_p9 }
   0xe   : > { %p211_p11 = scmp.lt.s32.totalorder (!%p174_p10), %s627_s12, 1  ;;  %s207_s8 = sand.u32 (!%p174_p10), 1, %s619_s10  }
   0xf   : > { %177 = sbr.rel (%p174_p10) target bundleno = 172 (0xac), region = 28  ;;  %s483_s15 = sshll.u32 (!%p174_p10), %s207_s8, 3 }
  0x10   : > { %s497_s16 = sshll.u32 (!%p174_p10), %s627_s12, 3  ;;  %s209_s24 = scalar_lea.vmem (!%p174_p10), [#allocation3], %s483_s15 }
  0x11   : > { %s370_s23 = scalar_lea.hbm (!%p174_p10), %s767_s2, %s497_s16  ;;  %s372_s25 = sshll.u32 (!%p174_p10), %s209_s24, 4  ;;  %s373_s25 = int_to_ptr.vmem [resolvable:$true] %s372_s25 }
  0x12   : > { %s374_s26 = sshll.u32 (!%p174_p10), %s370_s23, 4  ;;  %s358_s27 = scalar_lea.sflag (!%p174_p10), [#allocation4], %s207_s8  ;;  %s375_s26 = int_to_ptr.hbm [resolvable:$true] %s374_s26 }
  0x13   : > { %s571_s28 = sshra.s32 (!%p174_p10), %s375_s26, 4  ;;  %s572_s28 = int_to_ptr.hbm [resolvable:$true] %s571_s28 }
  0x14   : > { %v491_v0 = vld [vmem:[%s766_s1 + $0x10] sm:$0xff]  ;;  %v240_v1 = vld [vmem:[%s766_s1] sm:$0xff]  ;;  %v494_v2 = vld [vmem:[%s766_s1 + $0x18] sm:$0xff]  ;;  %vm236_vm0 = vcmask 261120   ;;  %s212_s3 = scalar_select %p211_p11, %s627_s12, 1  ;;  %v637_v4 = vmov 0.0  }
  0x15   : > { %316 = vmatpush.msra.mxu2 %v491_v0  ;;  %260 = vmatpush.msra.mxu0 %v240_v1  ;;  %v488_v3 = vld [vmem:[%s766_s1 + $0x8] sm:$0xff]  ;;  %237 = vst.msk [vmem:[#allocation2] sm:$0xff] %vm236_vm0, %v637_v4  ;;  %vm241_vm1 = vcmask 64512   ;;  %s573_s12 = scalar_lea.hbm %s572_s28, 8  ;;  %p578_p1 = scmp.lt.s32.totalorder %s572_s28, %s767_s2 }
  0x16   : > { %344 = vmatpush.msra.mxu3 %v494_v2  ;;  %288 = vmatpush.msra.mxu1 %v488_v3  ;;  %s500_s4 = sshll.u32 %s212_s3, 5  ;;  %p574_p12 = scmp.ne.s32.totalorder %s572_s28, %s573_s12 }
  0x17   : > { %s221_s7 = scalar_lea.vmem %s765_s0, %s500_s4  ;;  %s577_s3 = scalar_lea.hbm %s767_s2, 16 }
  0x18   : > { %v490_v5 = vld [vmem:[%s221_s7 + $0x10] sm:$0xff]  ;;  %v239_v6 = vld [vmem:[%s221_s7] sm:$0xff]  ;;  %v493_v7 = vld [vmem:[%s221_s7 + $0x18] sm:$0xff]  ;;  %p575_p13 = pnand %p574_p12, %p693_p4  ;;  %p579_p2 = scmp.lt.s32.totalorder %s577_s3, %s573_s12 }
  0x19   : > { %492 = vmatmul.msk.f32.vlgmr.msra.gmra.mxu2 %vm241_vm1, %v490_v5  ;;  %486 = vmatmul.msk.f32.vlgmr.msra.gmra.mxu0 %vm241_vm1, %v239_v6  ;;  %v487_v8 = vld [vmem:[%s221_s7 + $0x8] sm:$0xff] }
  0x1a   : > { %495 = vmatmul.msk.f32.vlgmr.msra.gmra.mxu3 %vm241_vm1, %v493_v7  ;;  %489 = vmatmul.msk.f32.vlgmr.msra.gmra.mxu1 %vm241_vm1, %v487_v8  ;;  %p576_p0 = pneg %p575_p13  ;;  %p580_p3 = por %p579_p2, %p578_p1 }
  0x1c   : > { %v238_v9 = vld [vmem:[#allocation2] sm:$0xff]  ;;  %p581_p5 = pnand %p580_p3, %p576_p0 }
  0x96   : > { %v262_v10 = vpop.f32.mrf.mxu0 }
  0x97   : > { %v265_v11 = vadd.f32 %v262_v10, %v238_v9  ;;  %v290_v12 = vpop.f32.mrf.mxu1 }
  0x99   : > { %v293_v13 = vadd.f32 %v290_v12, %v265_v11 }
  0x9c   : > { %v318_v14 = vpop.f32.mrf.mxu2 }
  0x9d   : > { %v321_v15 = vadd.f32 %v318_v14, %v293_v13  ;;  %v346_v16 = vpop.f32.mrf.mxu3 }
  0x9f   : > { %v349_v17 = vadd.f32 %v346_v16, %v321_v15 }
  0xa1   : > { %351 = vst.msk [vmem:[#allocation2] sm:$0xff] %vm236_vm0, %v349_v17 }
  0xa8   : > { %v355_v18 = vld [vmem:[#allocation2] sm:$0xff] }
  0xa9   : > { %356 = vst.msk [vmem:[%s209_s24] sm:$0xff] %vm236_vm0, %v355_v18 }
  0xaa   : > { %584 = shalt.err (!%p581_p5)
}
  0xab   : > { %501 = dma.vmem_to_hbm [thread:$0]  (%p693_p4), %s373_s25, 128, %s375_s26, %s358_s27  }
  0xac PF: > { %p507_p6 = scmp.ge.s32.totalorder %s635_s14, 2  ;;  %s386_s6 = sand.u32 1, %s615_s9  }
  0xad   : > { %s387_s7 = scalar_lea.sflag [#allocation4], %s386_s6 }
  0xae   : > { %p504_p7 = pnand %p507_p6, %p700_p8 }
  0xb0   : > { %p505_p9 = pneg %p504_p7 }
  0xb2   : > { %610 = dma.done.wait (%p505_p9), %s387_s7, 128  }
  0xb3   : > { %612 = vsyncadd (%p505_p9), %s387_s7, 4294967168  ;;  %s15_s14 = sadd.s32 1, %s635_s14   ;;  %s770_s9 = smov %s619_s10 }
  0xb4   : > { %p12_p10 = scmp.ge.s32.totalorder %s15_s14, 4   ;;  %s771_s10 = smov %s623_s11 }
  0xb5   : > { %s772_s11 = smov %s706_s22  ;;  %s773_s12 = smov %s631_s13 }
  0xb6   : > { %s774_s13 = smov %s776_s17  ;;  %14 = sbr.rel (!%p12_p10) target bundleno = 4 (0x4), region = 80 }
  0xbb   :  { %393 = vsyncpa [#allocation4], 1 }
  0xbc   :  { %395 = vsyncpa [#allocation4 + $0x1], 1 }

// kernel: attention_forward.4
= control target key start
LH: loop header
LB: loop body
LE: loop exit
PB: predicated region body
PF: predicated region fallthrough
CT: control target
= control target key end

     0   :  { %s723_s12 = smov 0   ;;  %s725_s13 = smov 0   ;;  %s805_s0 = inlined_call_operand.vmem [shape: f32[3,4,2,8,8], index: 0, kind: input, shape index: {}, may-alias: {0,1,2}]   ;;  %s806_s1 = inlined_call_operand.vmem [shape: f32[3,4,2,8,8], index: 1, kind: input, shape index: {}, may-alias: {0,1,2}]   ;;  %s807_s2 = inlined_call_operand.vmem [shape: f32[3,4,2,8,8], index: 2, kind: input, shape index: {}, may-alias: {0,1,2}]   ;;  %s808_s3 = inlined_call_operand.vmem [shape: f32[2,4,8,8], index: 3, kind: output, shape index: {}]  }
   0x1   :  { %s727_s14 = smov 0   ;;  %s729_s15 = smov 0  }
   0x2   :  { %s731_s16 = smov 0  }
   0x3 LB: > { %s35_s17 = sadd.s32 1, %s690_s14  ;;  %s39_s18 = sadd.s32 1, %s694_s15  ;;  %s698_s16 = sphi %s731_s16, %s13_s16   ;;  %s694_s15 = sphi %s729_s15, %s812_s15   ;;  %s690_s14 = sphi %s727_s14, %s811_s14   ;;  %s686_s13 = sphi %s725_s13, %s810_s13   ;;  %s682_s12 = sphi %s723_s12, %s809_s12  }
   0x4   : > { %p37_p0 = scmp.ge.s32.totalorder %s35_s17, 4  ;;  %p592_p1 = scmp.ge.s32.totalorder %s698_s16, 1 }
   0x5   : > { %p219_p2 = scmp.lt.s32.totalorder %s698_s16, 9 }
   0x6   : > { %s814_s17 = smov (%p37_p0, %s35_s17), 0  ;;  %s816_s18 = smov (!%p37_p0, %s39_s18), %s694_s15 }
   0x7   : > { %p220_p3 = pnand %p592_p1, %p219_p2  ;;  %p41_p4 = scmp.ge.s32.totalorder %s816_s18, 2 }
   0x8   : > { %p279_p5 = scmp.lt.s32.totalorder (!%p220_p3), %s682_s12, 3  ;;  %p281_p6 = scmp.lt.s32.totalorder (!%p220_p3), %s686_s13, 1 }
   0x9   : > { %s818_s18 = smov (%p41_p4, %s816_s18), 0  ;;  %223 = sbr.rel (%p220_p3) target bundleno = 622 (0x26e), region = 32 }
   0xe   : > { %s820_s12 = smov (!%p279_p5, %s682_s12), 3  ;;  %s822_s13 = smov (!%p281_p6, %s686_s13), 1  ;;  %vm332_vm0 = vcmask 64512   ;;  %vm329_vm1 = vcmask 7168   ;;  %v700_v3 = vmov -inf   ;;  %v701_v6 = vmov 0  }
   0xf   : > { %s593_s19 = sshll.u32 %s820_s12, 1  ;;  %330 = vst.msk [vmem:[#allocation2] sm:$0xff] %vm329_vm1, %v700_v3  ;;  %651 = vset.pattern.permute.xlu0 %v701_v6  ;;  %652 = vset.pattern.permute.xlu1 %v701_v6  ;;  %v702_v7 = vmov 0.0   ;;  %s599_s4 = sshll.u32 %s822_s13, 2 }
  0x10   : > { %s287_s20 = sadd.s32 %s593_s19, %s822_s13  ;;  %653 = vset.pattern.permute.xlu2 %v701_v6  ;;  %331 = vst.msk [vmem:[#allocation3] sm:$0xff] %vm329_vm1, %v702_v7  ;;  %s322_s5 = sadd.s32 %s599_s4, %s820_s12 }
  0x11   : > { %s759_s21 = sshll.u32 %s287_s20, 3  ;;  %333 = vst.msk [vmem:[#allocation4] sm:$0xff] %vm332_vm0, %v702_v7  ;;  %s600_s6 = sshll.u32 %s322_s5, 3 }
  0x12   : > { %s516_s24 = scalar_lea.vmem %s806_s1, %s759_s21  ;;  %s289_s27 = scalar_lea.vmem %s805_s0, %s759_s21 }
  0x13   : > { %v601_v0 = vld [vmem:[%s516_s24 + $0x40] sm:$0xff]  ;;  %s522_s30 = scalar_lea.vmem %s807_s2, %s759_s21  ;;  %s324_s9 = scalar_lea.vmem %s808_s3, %s600_s6 }
  0x14   : > { %v334_v1 = vld [vmem:[%s289_s27] sm:$0xff]  ;;  %602 = vmatpush.xpose.msk.msra.mxu0 %vm332_vm0, %v601_v0 }
  0x15   : > { %v335_v2 = vmul.f32 0.35355338, %v334_v1  ;;  %v604_v12 = vld [vmem:[%s522_s30 + $0x80] sm:$0xff] }
  0x16   : > { %v364_v8 = vld [vmem:[#allocation2] sm:$0xff]  ;;  %414 = vmatpush.msra.mxu1 %v604_v12 }
  0x17   : > { %603 = vmatmul.msk.f32.vlgmr.msra.gmra.mxu0 %vm332_vm0, %v335_v2  ;;  %v380_v20 = vld [vmem:[#allocation3] sm:$0xff] }
  0x18   : > { %v388_v26 = vld [vmem:[#allocation4] sm:$0xff] }
  0x94   : > { %v361_v4 = vpop.f32.mrf.mxu0 }
  0x95   : > { %v365_v5 = vsel %vm332_vm0, %v361_v4, -inf }
  0x96   : > { %366 = vmax.xlane.f32.xlu0 %v365_v5 }
 0x109   : > { %v367_v9 = vpop.xlane.xlu0 %366 }
 0x10a   : > { %v368_v10 = vmax.f32 %v364_v8, %v367_v9 }
 0x10c   : > { %v369_v11 = vsub.f32 %v364_v8, %v368_v10  ;;  %421 = vst.msk [vmem:[#allocation2] sm:$0xff] %vm329_vm1, %v368_v10  ;;  %374 = vperm.xlu0 %651, %v368_v10  }
 0x10e   : > { %v370_v18 = vmul.f32 1.442695, %v369_v11 }
 0x17e   : > { %v375_v13 = vpop.permute.xlu0 %374 }
 0x17f   : > { %v377_v14 = vsub.f32 %v361_v4, %v375_v13 }
 0x181   : > { %v378_v15 = vmul.f32 1.442695, %v377_v14 }
 0x183   : > { %654 = vpow2.f32 %v378_v15 }
 0x184   : > { %656 = vpow2.f32 %v370_v18 }
 0x189   : > { %v655_v16 = vpop.eup %654 }
 0x18a   : > { %605 = vmatmul.msk.f32.vlgmr.msra.gmra.mxu1 %vm332_vm0, %v655_v16  ;;  %v382_v17 = vsel %vm332_vm0, %v655_v16, 0.0  ;;  %v657_v19 = vpop.eup %656 }
 0x18b   : > { %383 = vadd.xlane.f32.xlu1 %v382_v17  ;;  %v381_v21 = vmul.f32 %v657_v19, %v380_v20 }
 0x1a4   : > { %391 = vperm.xlu1 %652, %v657_v19  }
 0x1fe   : > { %v384_v22 = vpop.xlane.xlu1 %383 }
 0x1ff   : > { %v385_v23 = vadd.f32 %v384_v22, %v381_v21 }
 0x201   : > { %387 = vst.msk [vmem:[#allocation3] sm:$0xff] %vm329_vm1, %v385_v23 }
 0x207   : > { %v416_v29 = vpop.f32.mrf.mxu1 }
 0x208   : > { %v426_v24 = vld [vmem:[#allocation3] sm:$0xff] }
 0x209   : > { %658 = vrcp.f32 %v426_v24 }
 0x20f   : > { %v659_v25 = vpop.eup %658 }
 0x210   : > { %430 = vperm.xlu2 %653, %v659_v25  }
 0x216   : > { %v392_v27 = vpop.permute.xlu1 %391 }
 0x217   : > { %v394_v28 = vmul.f32 %v392_v27, %v388_v26 }
 0x219   : > { %v419_v30 = vadd.f32 %v416_v29, %v394_v28 }
 0x21b   : > { %420 = vst.msk [vmem:[#allocation4] sm:$0xff] %vm332_vm0, %v419_v30 }
 0x222   : > { %v425_v31 = vld [vmem:[#allocation4] sm:$0xff] }
 0x26a   : > { %v431_v32 = vpop.permute.xlu2 %430 }
 0x26b   : > { %v433_v33 = vmul.f32 %v431_v32, %v425_v31 }
 0x26d   : > { %434 = vst.msk [vmem:[%s324_s9] sm:$0xff] %vm332_vm0, %v433_v33 }
 0x26e PF: > { %s13_s16 = sadd.s32 1, %s698_s16   ;;  %s809_s12 = smov %s690_s14 }
 0x26f   : > { %p10_p7 = scmp.ge.s32.totalorder %s13_s16, 10   ;;  %s810_s13 = smov %s694_s15 }
 0x270   : > { %s811_s14 = smov %s814_s17  ;;  %s812_s15 = smov %s818_s18 }
 0x271   :  { %12 = sbr.rel (!%p10_p7) target bundleno = 3 (0x3), region = 76 }

// kernel: attention_forward.3
= control target key start
LH: loop header
LB: loop body
LE: loop exit
PB: predicated region body
PF: predicated region fallthrough
CT: control target
= control target key end

     0   :  { %7 = vsyncpa [#allocation4], 0  ;;  %s441_s0 = inlined_call_operand.hbm [shape: f32[16,32], index: 0, kind: input, shape index: {}]   ;;  %s442_s1 = inlined_call_operand.hbm [shape: f32[1,32,96], index: 1, kind: input, shape index: {}]   ;;  %s443_s2 = inlined_call_operand.vmem [shape: f32[12,16,8], index: 2, kind: output, shape index: {}]  }
   0x1   :  { %s13_s11 = sshll.u32 %s441_s0, 4  ;;  %s14_s11 = int_to_ptr.hbm [resolvable:$true] %s13_s11 }
   0x2   :  { %8 = vsyncpa [#allocation6], 0  ;;  %s304_s12 = smov [#allocation3]   ;;  %s26_s16 = sshll.u32 %s442_s1, 4  ;;  %s27_s16 = int_to_ptr.hbm [resolvable:$true] %s26_s16 }
   0x3   :  { %s15_s13 = sshll.u32 %s304_s12, 4  ;;  %s305_s17 = smov 128   ;;  %s16_s13 = int_to_ptr.vmem [resolvable:$true] %s15_s13 }
   0x4   :  { %s306_s18 = smov 8   ;;  %s307_s19 = smov [#allocation5]  }
   0x5   :  { %21 = dma.hbm_to_vmem [thread:$0]  %s14_s11, 256, %s16_s13, [#allocation4], %s305_s17, %s305_s17, %s306_s18  }
   0x6   :  { %s28_s20 = sshll.u32 %s307_s19, 4  ;;  %s29_s20 = int_to_ptr.vmem [resolvable:$true] %s28_s20 }
   0x7   :  { %34 = dma.hbm_to_vmem [thread:$0]  %s27_s16, 512, %s29_s20, [#allocation6], %s305_s17, %s305_s17, %s306_s18  }
   0x8   :  { %300 = dma.done.wait [#allocation4], 256  }
   0x9   :  { %301 = vsyncadd [#allocation4], 4294967040 }
   0xa   :  { %302 = dma.done.wait [#allocation6], 512  }
   0xb   :  { %303 = vsyncadd [#allocation6], 4294966784  ;;  %vm47_vm0 = vcmask 785408   ;;  %v308_v0 = vmov 0.0   ;;  %v57_v1 = vld [vmem:[#allocation5 + $0x18] sm:$0xff]  ;;  %v56_v2 = vld [vmem:[#allocation5 + $0x10] sm:$0xff] }
   0xc   :  { %48 = vst.msk [vmem:[#allocation2] sm:$0xff] %vm47_vm0, %v308_v0  ;;  %77 = vmatpush.msra.mxu0 %v57_v1  ;;  %232 = vmatpush.msra.mxu1 %v57_v1  ;;  %v55_v3 = vld [vmem:[#allocation5 + $0x8] sm:$0xff]  ;;  %v54_v4 = vld [vmem:[#allocation5] sm:$0xff]  ;;  %v52_v5 = vld [vmem:[#allocation3] sm:$0xff]  ;;  %vm58_vm1 = vcmask 261120   ;;  %vm98_vm2 = vcmask 64512  }
   0xd   :  { %49 = vst.msk [vmem:[#allocation2 + $0x8] sm:$0xff] %vm47_vm0, %v308_v0  ;;  %v53_v6 = vld [vmem:[#allocation3 + $0x8] sm:$0xff]  ;;  %s309_s0 = smov 104   ;;  %s310_s22 = smov 112  }
   0xe   :  { %78 = vmatpush.msra.mxu0 %v56_v2  ;;  %233 = vmatpush.msra.mxu1 %v56_v2  ;;  %s311_s23 = smov 120   ;;  %s312_s26 = smov 88  }
   0xf   :  { %s313_s27 = smov 96   ;;  %s314_s28 = smov 80  }
  0x10   :  { %79 = vmatpush.msra.mxu0 %v55_v3  ;;  %234 = vmatpush.msra.mxu1 %v55_v3  ;;  %s315_s29 = smov 64   ;;  %s316_s30 = smov 72  }
  0x11   :  { %s317_s3 = smov 56   ;;  %s318_s4 = smov 40  }
  0x12   :  { %80 = vmatpush.msra.mxu0 %v54_v4  ;;  %235 = vmatpush.msra.mxu1 %v54_v4  ;;  %s319_s5 = smov 48  }
  0x13   :  { %208 = vmatmul.msk.f32.vlgmr.msra.gmra.mxu0 %vm58_vm1, %v52_v5  ;;  %209 = vmatmul.msk.f32.vlgmr.msra.gmra.mxu1 %vm58_vm1, %v53_v6  ;;  %v50_v7 = vld [vmem:[#allocation2] sm:$0xff] }
  0x14   :  { %v51_v8 = vld [vmem:[#allocation2 + $0x8] sm:$0xff] }
  0x90   :  { %v82_v9 = vpop.f32.mrf.mxu0  ;;  %v85_v10 = vpop.f32.mrf.mxu1 }
  0x91   :  { %v88_v11 = vadd.f32 %v82_v9, %v50_v7  ;;  %v89_v12 = vadd.f32 %v85_v10, %v51_v8 }
  0x93   :  { %91 = vst.msk [vmem:[#allocation2] sm:$0xff] %vm47_vm0, %v88_v11 }
  0x94   :  { %92 = vst.msk [vmem:[#allocation2 + $0x8] sm:$0xff] %vm47_vm0, %v89_v12 }
  0x9a   :  { %v96_v13 = vld [vmem:[#allocation2] sm:$0xff] }
  0x9b   :  { %121 = vrot.lane.b32.xlu2 %v96_v13, %s309_s0  ;;  %99 = vst.msk [vmem:[%s443_s2] sm:$0xff] %vm98_vm2, %v96_v13  ;;  %112 = vrot.lane.b32.xlu1 %v96_v13, %s310_s22  ;;  %v97_v14 = vld [vmem:[#allocation2 + $0x8] sm:$0xff] }
  0x9c   :  { %103 = vrot.lane.b32.xlu0 %v96_v13, %s311_s23  ;;  %100 = vst.msk [vmem:[%s443_s2 + $0x8] sm:$0xff] %vm98_vm2, %v97_v14 }
  0xa3   :  { %123 = vrot.lane.b32.xlu2 %v97_v14, %s309_s0  ;;  %114 = vrot.lane.b32.xlu1 %v97_v14, %s310_s22 }
  0xa4   :  { %105 = vrot.lane.b32.xlu0 %v97_v14, %s311_s23 }
  0xab   :  { %139 = vrot.lane.b32.xlu2 %v96_v13, %s312_s26  ;;  %132 = vrot.lane.b32.xlu1 %v97_v14, %s313_s27 }
  0xac   :  { %130 = vrot.lane.b32.xlu0 %v96_v13, %s313_s27 }
  0xb3   :  { %150 = vrot.lane.b32.xlu2 %v97_v14, %s314_s28  ;;  %148 = vrot.lane.b32.xlu1 %v96_v13, %s314_s28 }
  0xb4   :  { %141 = vrot.lane.b32.xlu0 %v97_v14, %s312_s26 }
  0xbb   :  { %166 = vrot.lane.b32.xlu2 %v96_v13, %s315_s29  ;;  %159 = vrot.lane.b32.xlu1 %v97_v14, %s316_s30 }
  0xbc   :  { %157 = vrot.lane.b32.xlu0 %v96_v13, %s316_s30 }
  0xc3   :  { %177 = vrot.lane.b32.xlu2 %v97_v14, %s317_s3  ;;  %175 = vrot.lane.b32.xlu1 %v96_v13, %s317_s3 }
  0xc4   :  { %168 = vrot.lane.b32.xlu0 %v97_v14, %s315_s29 }
  0xcb   :  { %193 = vrot.lane.b32.xlu2 %v96_v13, %s318_s4  ;;  %186 = vrot.lane.b32.xlu1 %v97_v14, %s319_s5 }
  0xcc   :  { %184 = vrot.lane.b32.xlu0 %v96_v13, %s319_s5 }
  0xd4   :  { %195 = vrot.lane.b32.xlu0 %v97_v14, %s318_s4 }
  0xf5   :  { %v122_v15 = vpop.permute.xlu2 %121 }
  0xf6   :  { %214 = vst.msk [vmem:[%s443_s2 + $0x30] sm:$0xff] %vm98_vm2, %v122_v15 }
  0xfd   :  { %v124_v16 = vpop.permute.xlu2 %123 }
  0xfe   :  { %215 = vst.msk [vmem:[%s443_s2 + $0x38] sm:$0xff] %vm98_vm2, %v124_v16 }
 0x105   :  { %v140_v17 = vpop.permute.xlu2 %139 }
 0x106   :  { %218 = vst.msk [vmem:[%s443_s2 + $0x50] sm:$0xff] %vm98_vm2, %v140_v17 }
 0x10d   :  { %v151_v18 = vpop.permute.xlu2 %150  ;;  %v113_v19 = vpop.permute.xlu1 %112 }
 0x10e   :  { %221 = vst.msk [vmem:[%s443_s2 + $0x68] sm:$0xff] %vm98_vm2, %v151_v18  ;;  %v104_v20 = vpop.permute.xlu0 %103 }
 0x10f   :  { %212 = vst.msk [vmem:[%s443_s2 + $0x20] sm:$0xff] %vm98_vm2, %v113_v19 }
 0x110   :  { %210 = vst.msk [vmem:[%s443_s2 + $0x10] sm:$0xff] %vm98_vm2, %v104_v20 }
 0x115   :  { %v167_v21 = vpop.permute.xlu2 %166  ;;  %v115_v22 = vpop.permute.xlu1 %114 }
 0x116   :  { %224 = vst.msk [vmem:[%s443_s2 + $0x80] sm:$0xff] %vm98_vm2, %v167_v21  ;;  %v106_v23 = vpop.permute.xlu0 %105 }
 0x117   :  { %213 = vst.msk [vmem:[%s443_s2 + $0x28] sm:$0xff] %vm98_vm2, %v115_v22 }
 0x118   :  { %211 = vst.msk [vmem:[%s443_s2 + $0x18] sm:$0xff] %vm98_vm2, %v106_v23 }
 0x11d   :  { %v178_v24 = vpop.permute.xlu2 %177  ;;  %v133_v25 = vpop.permute.xlu1 %132 }
 0x11e   :  { %227 = vst.msk [vmem:[%s443_s2 + $0x98] sm:$0xff] %vm98_vm2, %v178_v24  ;;  %v131_v26 = vpop.permute.xlu0 %130 }
 0x11f   :  { %217 = vst.msk [vmem:[%s443_s2 + $0x48] sm:$0xff] %vm98_vm2, %v133_v25 }
 0x120   :  { %216 = vst.msk [vmem:[%s443_s2 + $0x40] sm:$0xff] %vm98_vm2, %v131_v26 }
 0x125   :  { %v194_v27 = vpop.permute.xlu2 %193  ;;  %v149_v28 = vpop.permute.xlu1 %148 }
 0x126   :  { %230 = vst.msk [vmem:[%s443_s2 + $0xb0] sm:$0xff] %vm98_vm2, %v194_v27  ;;  %v142_v29 = vpop.permute.xlu0 %141 }
 0x127   :  { %220 = vst.msk [vmem:[%s443_s2 + $0x60] sm:$0xff] %vm98_vm2, %v149_v28 }
 0x128   :  { %219 = vst.msk [vmem:[%s443_s2 + $0x58] sm:$0xff] %vm98_vm2, %v142_v29 }
 0x12d   :  { %v160_v30 = vpop.permute.xlu1 %159 }
 0x12e   :  { %223 = vst.msk [vmem:[%s443_s2 + $0x78] sm:$0xff] %vm98_vm2, %v160_v30  ;;  %v158_v31 = vpop.permute.xlu0 %157 }
 0x12f   :  { %222 = vst.msk [vmem:[%s443_s2 + $0x70] sm:$0xff] %vm98_vm2, %v158_v31 }
 0x135   :  { %v176_v32 = vpop.permute.xlu1 %175 }
 0x136   :  { %226 = vst.msk [vmem:[%s443_s2 + $0x90] sm:$0xff] %vm98_vm2, %v176_v32  ;;  %v169_v33 = vpop.permute.xlu0 %168 }
 0x137   :  { %225 = vst.msk [vmem:[%s443_s2 + $0x88] sm:$0xff] %vm98_vm2, %v169_v33 }
 0x13d   :  { %v187_v34 = vpop.permute.xlu1 %186 }
 0x13e   :  { %229 = vst.msk [vmem:[%s443_s2 + $0xa8] sm:$0xff] %vm98_vm2, %v187_v34  ;;  %v185_v35 = vpop.permute.xlu0 %184 }
 0x13f   :  { %228 = vst.msk [vmem:[%s443_s2 + $0xa0] sm:$0xff] %vm98_vm2, %v185_v35 }
 0x146   :  { %v196_v36 = vpop.permute.xlu0 %195 }
 0x147   :  { %231 = vst.msk [vmem:[%s443_s2 + $0xb8] sm:$0xff] %vm98_vm2, %v196_v36 }
 0x148   :  { %206 = vsyncpa [#allocation4], 1 }
 0x149   :  { %207 = vsyncpa [#allocation6], 1 }

</bundles_post_ra>
